<compile_context>
chip_gen: v7x
topology: tpu7x:2x2x1
jax: 0.10.0
libtpu: 0.0.40
codegen_flags: <defaults>
</compile_context>

<pallas_src>
import math
import functools

import jax
import jax.numpy as jnp
import numpy as np
from jax.experimental import pallas as pl
from jax.experimental.pallas import tpu as pltpu


_MASKED = -1e30  # finite "masked" score: exp() underflows to exactly 0.0


# --------------------------------------------------------------------------
# Kernel
# --------------------------------------------------------------------------
def _decoder_kernel(x_ref, mask_ref, k_ref, v_ref, vout_ref,
                    w_emb_ref, b_emb_ref, wq_ref, wout_ref, wqcls_ref,
                    o_ref, *, norm_factor, inv_sqrt_e, C):
    f32 = jnp.float32
    cdt = k_ref.dtype                       # streaming / matmul-operand dtype
    BB, H, KD, G = k_ref.shape
    NQ = mask_ref.shape[1]
    E = wqcls_ref.shape[0]
    BM = BB * NQ

    # ---- initial_embedding over all BB*NQ rows (one MXU matmul) ----------
    x = x_ref[...]                                                  # (BM, IN)
    emb = jnp.dot(x, w_emb_ref[...], preferred_element_type=f32)
    emb = emb + b_emb_ref[...]                                      # (BM, E) f32
    emb_c = emb.astype(cdt)

    k = k_ref[...]                                                  # (BB,H,KD,G)
    v = v_ref[...]                                                  # (BB,H,KD,G)
    wq = wq_ref[...]                                                # (H,E,KD)
    wout = wout_ref[...]                                            # (H,KD,E)
    allowed = mask_ref[...] != 0                                    # (BB,NQ,G) bool

    # ---- multi-head attention; softmax in f32; W_out folded per head -----
    ctx = jnp.zeros((BM, E), f32)
    for h in range(H):                      # H is small & static -> unrolled
        qh = jnp.dot(emb_c, wq[h], preferred_element_type=f32)      # (BM, KD)
        qh = qh.reshape(BB, NQ, KD).astype(cdt)
        compat = norm_factor * jnp.einsum('bqk,bkg->bqg', qh, k[:, h],
                                          preferred_element_type=f32)
        compat = jnp.where(allowed, compat, _MASKED)
        m = jnp.max(compat, axis=-1, keepdims=True)
        e = jnp.exp(compat - m)             # masked lanes underflow to 0.0
        s = jnp.sum(e, axis=-1, keepdims=True)
        attn = (e / s).astype(cdt)          # exact divide: free vs. DMA stream
        head = jnp.einsum('bqg,bkg->bqk', attn, v[:, h],            # contract G
                          preferred_element_type=f32)               # (BB,NQ,KD)
        ctx = ctx + jnp.dot(head.reshape(BM, KD).astype(cdt), wout[h],
                            preferred_element_type=f32)             # (BM, E)

    # ---- ClassifierOutput -------------------------------------------------
    qc = jnp.dot(ctx.astype(cdt), wqcls_ref[...], preferred_element_type=f32)
    qc = qc.reshape(BB, NQ, E).astype(cdt)
    z = jnp.einsum('bqe,beg->bqg', qc, vout_ref[...],
                   preferred_element_type=f32)                      # (BB,NQ,G)
    o_ref[...] = (C * jnp.tanh(z * inv_sqrt_e)).astype(o_ref.dtype)


# --------------------------------------------------------------------------
# VMEM budgeting helpers
# --------------------------------------------------------------------------
def _round_up(x, m):
    return ((x + m - 1) // m) * m


def _sublanes(itemsize):
    # native tile: 8 sublanes of 32-bit; narrower dtypes pack along sublanes
    return 8 * max(1, 4 // itemsize)


def _padded_tile_bytes(rows, cols, itemsize):
    return _round_up(rows, _sublanes(itemsize)) * _round_up(cols, 128) * itemsize


def _vmem_capacity_bytes():
    try:
        return int(pltpu.get_tpu_info().vmem_capacity_bytes)
    except Exception:
        return 64 * 1024 * 1024      # conservative fallback: v7x per-TC VMEM


# --------------------------------------------------------------------------
# One-time projection preparation (amortized across decode steps)
# --------------------------------------------------------------------------
def prepare_projections(K, V, V_output, *, compute_dtype=jnp.bfloat16):
    """One-time re-layout + cast of the encoder projections.

    K, V: (H, B, G, KD); V_output: (B, G, E).
    Returns K/V as (B, H, KD, G) and V_output as (B, E, G), all in
    `compute_dtype` (bf16 by default: halves the dominant HBM traffic).
    This is hoisted out of the per-decode-step path on purpose.
    """
    Kt = jnp.transpose(K, (1, 0, 3, 2)).astype(compute_dtype)
    Vt = jnp.transpose(V, (1, 0, 3, 2)).astype(compute_dtype)
    VOt = jnp.transpose(V_output, (0, 2, 1)).astype(compute_dtype)
    return {"K": Kt, "V": Vt, "V_output": VOt}


# --------------------------------------------------------------------------
# Per-step wrapper
# --------------------------------------------------------------------------
def decoder_apply(params, decoder_input, projections, mask, *, C=10.0,
                  out_dtype=jnp.float32, block_batch=None):
    """Decoder forward. mask: nonzero = attention allowed (int8 recommended)."""
    Kt, Vt, VOt = projections["K"], projections["V"], projections["V_output"]
    B, NQ, IN = decoder_input.shape
    _, H, KD, G = Kt.shape
    E = VOt.shape[1]
    assert H * KD == E, "embedding_size must equal n_heads * key_dim"
    assert Vt.shape == Kt.shape and VOt.shape == (B, E, G)
    assert mask.shape == (B, NQ, G)
    cdt = Kt.dtype

    in_b = jnp.dtype(cdt).itemsize
    out_b = jnp.dtype(out_dtype).itemsize
    mask_b = jnp.dtype(mask.dtype).itemsize

    # ---- VMEM budget -> batch-block size BB -------------------------------
    vmem_cap = _vmem_capacity_bytes()
    vmem_limit = int(0.9 * vmem_cap)

    def step_vmem_bytes(bb):
        gl = _round_up(G, 128)
        blocks = 0
        blocks += _padded_tile_bytes(bb * NQ, IN, in_b)                     # x
        blocks += bb * _round_up(NQ, _sublanes(mask_b)) * gl * mask_b       # mask
        blocks += 2 * bb * H * _round_up(KD, _sublanes(in_b)) * gl * in_b   # K+V
        blocks += bb * _round_up(E, _sublanes(in_b)) * gl * in_b            # V_out^T
        blocks += bb * _round_up(NQ, _sublanes(out_b)) * gl * out_b         # output
        weights = (_padded_tile_bytes(IN, E, in_b) + _padded_tile_bytes(1, E, 4)
                   + H * _padded_tile_bytes(E, KD, in_b)
                   + H * _padded_tile_bytes(KD, E, in_b)
                   + _padded_tile_bytes(E, E, in_b))
        live = 4 * bb * _round_up(NQ, 8) * gl * 4     # f32 softmax intermediates
        return 2 * (blocks + weights) + live          # x2: double buffering

    if block_batch is None:
        bb = min(B, max(1, pl.cdiv(128, NQ)))   # target ~128 MXU rows per step
        if B >= 2:
            bb = min(bb, pl.cdiv(B, 2))         # >=2 blocks -> both v7x TCs busy
        budget = int(0.75 * vmem_limit)
        while bb > 1 and step_vmem_bytes(bb) > budget:
            bb -= 1
    else:
        bb = max(1, min(block_batch, B))
    BB = bb
    BM = BB * NQ
    n_blocks = pl.cdiv(B, BB)

    # ---- per-step data: only free reshapes / tiny casts (no big HBM passes)
    x2 = decoder_input.reshape(B * NQ, IN).astype(cdt)
    W_emb = params["W_emb"].astype(cdt)                       # (IN, E)
    b_emb = params["b_emb"].astype(jnp.float32)               # (1, E)
    W_query = params["W_query"].astype(cdt)                   # (H, E, KD) native
    W_out = params["W_out"].astype(cdt)                       # (H, KD, E) native
    W_qcls = params["W_qcls"].astype(cdt)                     # (E, E)

    kernel = functools.partial(
        _decoder_kernel,
        norm_factor=1.0 / math.sqrt(KD),
        inv_sqrt_e=1.0 / math.sqrt(E),
        C=float(C))

    grid_spec = pltpu.PrefetchScalarGridSpec(
        num_scalar_prefetch=0,
        grid=(n_blocks,),
        in_specs=[
            pl.BlockSpec((BM, IN), lambda b: (b, 0)),               # x rows
            pl.BlockSpec((BB, NQ, G), lambda b: (b, 0, 0)),         # mask
            pl.BlockSpec((BB, H, KD, G), lambda b: (b, 0, 0, 0)),   # K
            pl.BlockSpec((BB, H, KD, G), lambda b: (b, 0, 0, 0)),   # V
            pl.BlockSpec((BB, E, G), lambda b: (b, 0, 0)),          # V_output^T
            pl.BlockSpec((IN, E), lambda b: (0, 0)),                # W_emb
            pl.BlockSpec((1, E), lambda b: (0, 0)),                 # b_emb (f32)
            pl.BlockSpec((H, E, KD), lambda b: (0, 0, 0)),          # W_query
            pl.BlockSpec((H, KD, E), lambda b: (0, 0, 0)),          # W_out
            pl.BlockSpec((E, E), lambda b: (0, 0)),                 # classifier W_q
        ],
        out_specs=pl.BlockSpec((BB, NQ, G), lambda b: (b, 0, 0)),
    )

    cost = pl.CostEstimate(
        flops=int(2 * B * NQ * (IN * E + 3 * E * E + 3 * E * G)),
        transcendentals=int(B * NQ * G * (H + 1)),
        bytes_accessed=int(B * NQ * IN * in_b + B * NQ * G * mask_b
                           + 2 * B * H * KD * G * in_b + B * E * G * in_b
                           + (IN * E + H * E * KD + H * KD * E + E * E) * in_b
                           + 4 * E + B * NQ * G * out_b))

    out = pl.pallas_call(
        kernel,
        out_shape=jax.ShapeDtypeStruct((B, NQ, G), out_dtype),
        grid_spec=grid_spec,
        compiler_params=pltpu.CompilerParams(
            dimension_semantics=("parallel",),     # batch blocks across TCs (v7x)
            vmem_limit_bytes=vmem_limit),
        cost_estimate=cost,
    )(x2, mask, Kt, Vt, VOt, W_emb, b_emb, W_query, W_out, W_qcls)

    return out


# --------------------------------------------------------------------------
# Params + pure-JAX reference (mirrors the PyTorch module)
# --------------------------------------------------------------------------
def init_params(key, num_heads, input_size, embedding_size):
    key_dim = embedding_size // num_heads
    k1, k2, k3, k4, k5 = jax.random.split(key, 5)

    def u(k, shape, stdv):
        return jax.random.uniform(k, shape, jnp.float32, -stdv, stdv)

    return {
        "W_emb": u(k1, (input_size, embedding_size), 1.0 / math.sqrt(input_size)),
        "b_emb": u(k2, (1, embedding_size), 1.0 / math.sqrt(input_size)),
        "W_query": u(k3, (num_heads, embedding_size, key_dim), 1.0 / math.sqrt(key_dim)),
        "W_out": u(k4, (num_heads, key_dim, embedding_size), 1.0 / math.sqrt(embedding_size)),
        "W_qcls": u(k5, (embedding_size, embedding_size), 1.0 / math.sqrt(embedding_size)),
    }


def decoder_reference(params, x, K, V, V_output, mask, C=10.0):
    """Pure-JAX reference mirroring the PyTorch forward."""
    H, B, G, KD = K.shape
    E = V_output.shape[-1]
    emb = x @ params["W_emb"] + params["b_emb"]                     # (B, NQ, E)
    mask_b = mask == 0                                              # not allowed
    q = jnp.einsum("bqe,hek->hbqk", emb, params["W_query"])
    compat = (1.0 / math.sqrt(KD)) * jnp.einsum("hbqk,hbgk->hbqg", q, K)
    compat = jnp.where(mask_b[None], -jnp.inf, compat)
    m = jnp.max(compat, axis=-1, keepdims=True)
    e = jnp.exp(compat - m)
    attn = e / jnp.sum(e, axis=-1, keepdims=True)
    attn = jnp.where(mask_b[None], 0.0, attn)
    heads = jnp.einsum("hbqg,hbgv->hbqv", attn, V)
    context = jnp.einsum("hbqv,hve->bqe", heads, params["W_out"])
    qc = jnp.einsum("bqe,ef->bqf", context, params["W_qcls"])
    z = jnp.einsum("bqf,bgf->bqg", qc, V_output) / math.sqrt(E)
    return C * jnp.tanh(z)


if __name__ == "__main__":
    # Small, module-consistent shapes.
    B, NQ, IN = 2, 8, 8          # batch, n_query, input_size
    H, E, G = 4, 32, 16          # num_heads, embedding_size, graph_size
    KD = E // H                  # key_dim == val_dim

    root = jax.random.PRNGKey(0)
    kp, kx, kk, kv, kvo, km = jax.random.split(root, 6)

    params = init_params(kp, H, IN, E)
    decoder_input = jax.random.normal(kx, (B, NQ, IN), jnp.float32)
    K = jax.random.normal(kk, (H, B, G, KD), jnp.float32)
    V = jax.random.normal(kv, (H, B, G, KD), jnp.float32)
    V_output = jax.random.normal(kvo, (B, G, E), jnp.float32)
    # mask: nonzero = allowed, 0 = not allowed; keep >=1 allowed node per row.
    mask = (jax.random.uniform(km, (B, NQ, G)) > 0.3).astype(jnp.int8)
    mask = mask.at[:, :, 0].set(1)

    ref = decoder_reference(params, decoder_input, K, V, V_output, mask, C=10.0)

    # ---- f32 streaming path: check against the reference ------------------
    proj_f32 = prepare_projections(K, V, V_output, compute_dtype=jnp.float32)
    out_f32 = decoder_apply(params, decoder_input, proj_f32, mask, C=10.0)
    out_f32 = jax.block_until_ready(out_f32)
    np.testing.assert_allclose(np.asarray(out_f32), np.asarray(ref),
                               rtol=5e-2, atol=5e-2)

    # ---- default bf16-streaming path: looser tolerance (inputs rounded) ---
    proj_bf16 = prepare_projections(K, V, V_output)              # bf16 default
    out_bf16 = decoder_apply(params, decoder_input, proj_bf16, mask, C=10.0)
    out_bf16 = jax.block_until_ready(out_bf16)
    assert out_bf16.shape == (B, NQ, G)
    assert bool(jnp.all(jnp.isfinite(out_bf16)))
    np.testing.assert_allclose(np.asarray(out_bf16), np.asarray(ref),
                               rtol=1e-1, atol=5e-1)

    print("KERNEL_OK")
</pallas_src>

<mosaic_0001>
module attributes {stable_mosaic.version = 11 : i64} {
  func.func @_decoder_kernel(%arg0: i32, %arg1: memref<8x8xf32, #tpu.memory_space<vmem>>, %arg2: memref<1x8x16xi8, #tpu.memory_space<vmem>>, %arg3: memref<1x4x8x16xf32, #tpu.memory_space<vmem>>, %arg4: memref<1x4x8x16xf32, #tpu.memory_space<vmem>>, %arg5: memref<1x32x16xf32, #tpu.memory_space<vmem>>, %arg6: memref<8x32xf32, #tpu.memory_space<vmem>>, %arg7: memref<1x32xf32, #tpu.memory_space<vmem>>, %arg8: memref<4x32x8xf32, #tpu.memory_space<vmem>>, %arg9: memref<4x8x32xf32, #tpu.memory_space<vmem>>, %arg10: memref<32x32xf32, #tpu.memory_space<vmem>>, %arg11: memref<1x8x16xf32, #tpu.memory_space<vmem>>) attributes {dimension_semantics = [#tpu.dimension_semantics<parallel>], iteration_bounds = array<i64: 2>, scalar_prefetch = 0 : i64, scratch_operands = 0 : i64, tpu.core_type = #tpu.core_type<tc>, window_params = [{transform_indices = @transform_0, window_bounds = array<i64: 8, 8>}, {transform_indices = @transform_1, window_bounds = array<i64: 1, 8, 16>}, {transform_indices = @transform_2, window_bounds = array<i64: 1, 4, 8, 16>}, {transform_indices = @transform_3, window_bounds = array<i64: 1, 4, 8, 16>}, {transform_indices = @transform_4, window_bounds = array<i64: 1, 32, 16>}, {pipeline_mode = #tpu.pipeline_mode<synchronous>, transform_indices = @transform_5, window_bounds = array<i64: 8, 32>}, {pipeline_mode = #tpu.pipeline_mode<synchronous>, transform_indices = @transform_6, window_bounds = array<i64: 1, 32>}, {pipeline_mode = #tpu.pipeline_mode<synchronous>, transform_indices = @transform_7, window_bounds = array<i64: 4, 32, 8>}, {pipeline_mode = #tpu.pipeline_mode<synchronous>, transform_indices = @transform_8, window_bounds = array<i64: 4, 8, 32>}, {pipeline_mode = #tpu.pipeline_mode<synchronous>, transform_indices = @transform_9, window_bounds = array<i64: 32, 32>}, {transform_indices = @transform_10, window_bounds = array<i64: 1, 8, 16>}]} {
    %c0 = arith.constant 0 : index
    %c0_0 = arith.constant 0 : index
    %0 = vector.load %arg1[%c0, %c0_0] : memref<8x8xf32, #tpu.memory_space<vmem>>, vector<8x8xf32>
    %c0_1 = arith.constant 0 : index
    %c0_2 = arith.constant 0 : index
    %1 = vector.load %arg6[%c0_1, %c0_2] : memref<8x32xf32, #tpu.memory_space<vmem>>, vector<8x32xf32>
    %cst = arith.constant dense<0.000000e+00> : vector<8x32xf32>
    %2 = tpu.matmul %0, %1, %cst {dimension_numbers = #tpu.dot_dimension_numbers<[1], [0], [0], [1], [0, 0, 1, 1], [], []>} : vector<8x8xf32>, vector<8x32xf32>, vector<8x32xf32> -> vector<8x32xf32>
    %c0_3 = arith.constant 0 : index
    %c0_4 = arith.constant 0 : index
    %3 = vector.load %arg7[%c0_3, %c0_4] : memref<1x32xf32, #tpu.memory_space<vmem>>, vector<1x32xf32>
    %4 = vector.broadcast %3 : vector<1x32xf32> to vector<8x32xf32>
    %5 = arith.addf %2, %4 : vector<8x32xf32>
    %c0_5 = arith.constant 0 : index
    %c0_6 = arith.constant 0 : index
    %c0_7 = arith.constant 0 : index
    %c0_8 = arith.constant 0 : index
    %6 = vector.load %arg3[%c0_5, %c0_6, %c0_7, %c0_8] : memref<1x4x8x16xf32, #tpu.memory_space<vmem>>, vector<1x4x8x16xf32>
    %c0_9 = arith.constant 0 : index
    %c0_10 = arith.constant 0 : index
    %c0_11 = arith.constant 0 : index
    %c0_12 = arith.constant 0 : index
    %7 = vector.load %arg4[%c0_9, %c0_10, %c0_11, %c0_12] : memref<1x4x8x16xf32, #tpu.memory_space<vmem>>, vector<1x4x8x16xf32>
    %c0_13 = arith.constant 0 : index
    %c0_14 = arith.constant 0 : index
    %c0_15 = arith.constant 0 : index
    %8 = vector.load %arg8[%c0_13, %c0_14, %c0_15] : memref<4x32x8xf32, #tpu.memory_space<vmem>>, vector<4x32x8xf32>
    %c0_16 = arith.constant 0 : index
    %c0_17 = arith.constant 0 : index
    %c0_18 = arith.constant 0 : index
    %9 = vector.load %arg9[%c0_16, %c0_17, %c0_18] : memref<4x8x32xf32, #tpu.memory_space<vmem>>, vector<4x8x32xf32>
    %c0_19 = arith.constant 0 : index
    %c0_20 = arith.constant 0 : index
    %c0_21 = arith.constant 0 : index
    %10 = vector.load %arg2[%c0_19, %c0_20, %c0_21] : memref<1x8x16xi8, #tpu.memory_space<vmem>>, vector<1x8x16xi8>
    %c0_i8 = arith.constant 0 : i8
    %11 = vector.broadcast %c0_i8 : i8 to vector<1x8x16xi8>
    %12 = arith.cmpi ne, %10, %11 : vector<1x8x16xi8>
    %cst_22 = arith.constant 0.000000e+00 : f32
    %13 = vector.broadcast %cst_22 : f32 to vector<8x32xf32>
    %14 = vector.extract_strided_slice %8 {offsets = [0, 0, 0], sizes = [1, 32, 8], strides = [1, 1, 1]} : vector<4x32x8xf32> to vector<1x32x8xf32>
    %15 = vector.shape_cast %14 : vector<1x32x8xf32> to vector<32x8xf32>
    %cst_23 = arith.constant dense<0.000000e+00> : vector<8x8xf32>
    %16 = tpu.matmul %5, %15, %cst_23 {dimension_numbers = #tpu.dot_dimension_numbers<[1], [0], [0], [1], [0, 0, 1, 1], [], []>} : vector<8x32xf32>, vector<32x8xf32>, vector<8x8xf32> -> vector<8x8xf32>
    %17 = vector.shape_cast %16 : vector<8x8xf32> to vector<1x8x8xf32>
    %18 = vector.extract_strided_slice %6 {offsets = [0, 0, 0, 0], sizes = [1, 1, 8, 16], strides = [1, 1, 1, 1]} : vector<1x4x8x16xf32> to vector<1x1x8x16xf32>
    %19 = vector.shape_cast %18 : vector<1x1x8x16xf32> to vector<1x8x16xf32>
    "tpu.trace_start"() <{level = 10 : i32, message = "bqk,bkg->bqg"}> : () -> ()
    %cst_24 = arith.constant dense<0.000000e+00> : vector<1x8x16xf32>
    %20 = tpu.matmul %17, %19, %cst_24 {dimension_numbers = #tpu.dot_dimension_numbers<[2], [1], [1], [2], [0, 0, 0, 1, 1, 2], [0], [0]>} : vector<1x8x8xf32>, vector<1x8x16xf32>, vector<1x8x16xf32> -> vector<1x8x16xf32>
    "tpu.trace_stop"() : () -> ()
    %cst_25 = arith.constant 0.353553385 : f32
    %21 = vector.broadcast %cst_25 : f32 to vector<1x8x16xf32>
    %22 = arith.mulf %21, %20 : vector<1x8x16xf32>
    %cst_26 = arith.constant -1.000000e+30 : f32
    %23 = vector.broadcast %cst_26 : f32 to vector<1x8x16xf32>
    %24 = arith.select %12, %22, %23 : vector<1x8x16xi1>, vector<1x8x16xf32>
    %cst_27 = arith.constant dense<0xFF800000> : vector<1x8xf32>
    %25 = vector.multi_reduction <maximumf>, %24, %cst_27 [2] : vector<1x8x16xf32> to vector<1x8xf32>
    %26 = vector.shape_cast %25 : vector<1x8xf32> to vector<1x8x1xf32>
    %27 = vector.broadcast %26 : vector<1x8x1xf32> to vector<1x8x16xf32>
    %28 = arith.subf %24, %27 : vector<1x8x16xf32>
    %29 = math.exp %28 : vector<1x8x16xf32>
    %cst_28 = arith.constant dense<0.000000e+00> : vector<1x8xf32>
    %30 = vector.multi_reduction <add>, %29, %cst_28 [2] : vector<1x8x16xf32> to vector<1x8xf32>
    %31 = vector.shape_cast %30 : vector<1x8xf32> to vector<1x8x1xf32>
    %32 = vector.broadcast %31 : vector<1x8x1xf32> to vector<1x8x16xf32>
    %33 = arith.divf %29, %32 : vector<1x8x16xf32>
    %34 = vector.extract_strided_slice %7 {offsets = [0, 0, 0, 0], sizes = [1, 1, 8, 16], strides = [1, 1, 1, 1]} : vector<1x4x8x16xf32> to vector<1x1x8x16xf32>
    %35 = vector.shape_cast %34 : vector<1x1x8x16xf32> to vector<1x8x16xf32>
    "tpu.trace_start"() <{level = 10 : i32, message = "bqg,bkg->bqk"}> : () -> ()
    %cst_29 = arith.constant dense<0.000000e+00> : vector<1x8x8xf32>
    %36 = tpu.matmul %33, %35, %cst_29 {dimension_numbers = #tpu.dot_dimension_numbers<[2], [2], [1], [1], [0, 0, 0, 1, 1, 1], [0], [0]>} : vector<1x8x16xf32>, vector<1x8x16xf32>, vector<1x8x8xf32> -> vector<1x8x8xf32>
    "tpu.trace_stop"() : () -> ()
    %37 = vector.shape_cast %36 : vector<1x8x8xf32> to vector<8x8xf32>
    %38 = vector.extract_strided_slice %9 {offsets = [0, 0, 0], sizes = [1, 8, 32], strides = [1, 1, 1]} : vector<4x8x32xf32> to vector<1x8x32xf32>
    %39 = vector.shape_cast %38 : vector<1x8x32xf32> to vector<8x32xf32>
    %cst_30 = arith.constant dense<0.000000e+00> : vector<8x32xf32>
    %40 = tpu.matmul %37, %39, %cst_30 {dimension_numbers = #tpu.dot_dimension_numbers<[1], [0], [0], [1], [0, 0, 1, 1], [], []>} : vector<8x8xf32>, vector<8x32xf32>, vector<8x32xf32> -> vector<8x32xf32>
    %41 = arith.addf %13, %40 : vector<8x32xf32>
    %42 = vector.extract_strided_slice %8 {offsets = [1, 0, 0], sizes = [1, 32, 8], strides = [1, 1, 1]} : vector<4x32x8xf32> to vector<1x32x8xf32>
    %43 = vector.shape_cast %42 : vector<1x32x8xf32> to vector<32x8xf32>
    %cst_31 = arith.constant dense<0.000000e+00> : vector<8x8xf32>
    %44 = tpu.matmul %5, %43, %cst_31 {dimension_numbers = #tpu.dot_dimension_numbers<[1], [0], [0], [1], [0, 0, 1, 1], [], []>} : vector<8x32xf32>, vector<32x8xf32>, vector<8x8xf32> -> vector<8x8xf32>
    %45 = vector.shape_cast %44 : vector<8x8xf32> to vector<1x8x8xf32>
    %46 = vector.extract_strided_slice %6 {offsets = [0, 1, 0, 0], sizes = [1, 1, 8, 16], strides = [1, 1, 1, 1]} : vector<1x4x8x16xf32> to vector<1x1x8x16xf32>
    %47 = vector.shape_cast %46 : vector<1x1x8x16xf32> to vector<1x8x16xf32>
    "tpu.trace_start"() <{level = 10 : i32, message = "bqk,bkg->bqg"}> : () -> ()
    %cst_32 = arith.constant dense<0.000000e+00> : vector<1x8x16xf32>
    %48 = tpu.matmul %45, %47, %cst_32 {dimension_numbers = #tpu.dot_dimension_numbers<[2], [1], [1], [2], [0, 0, 0, 1, 1, 2], [0], [0]>} : vector<1x8x8xf32>, vector<1x8x16xf32>, vector<1x8x16xf32> -> vector<1x8x16xf32>
    "tpu.trace_stop"() : () -> ()
    %cst_33 = arith.constant 0.353553385 : f32
    %49 = vector.broadcast %cst_33 : f32 to vector<1x8x16xf32>
    %50 = arith.mulf %49, %48 : vector<1x8x16xf32>
    %cst_34 = arith.constant -1.000000e+30 : f32
    %51 = vector.broadcast %cst_34 : f32 to vector<1x8x16xf32>
    %52 = arith.select %12, %50, %51 : vector<1x8x16xi1>, vector<1x8x16xf32>
    %cst_35 = arith.constant dense<0xFF800000> : vector<1x8xf32>
    %53 = vector.multi_reduction <maximumf>, %52, %cst_35 [2] : vector<1x8x16xf32> to vector<1x8xf32>
    %54 = vector.shape_cast %53 : vector<1x8xf32> to vector<1x8x1xf32>
    %55 = vector.broadcast %54 : vector<1x8x1xf32> to vector<1x8x16xf32>
    %56 = arith.subf %52, %55 : vector<1x8x16xf32>
    %57 = math.exp %56 : vector<1x8x16xf32>
    %cst_36 = arith.constant dense<0.000000e+00> : vector<1x8xf32>
    %58 = vector.multi_reduction <add>, %57, %cst_36 [2] : vector<1x8x16xf32> to vector<1x8xf32>
    %59 = vector.shape_cast %58 : vector<1x8xf32> to vector<1x8x1xf32>
    %60 = vector.broadcast %59 : vector<1x8x1xf32> to vector<1x8x16xf32>
    %61 = arith.divf %57, %60 : vector<1x8x16xf32>
    %62 = vector.extract_strided_slice %7 {offsets = [0, 1, 0, 0], sizes = [1, 1, 8, 16], strides = [1, 1, 1, 1]} : vector<1x4x8x16xf32> to vector<1x1x8x16xf32>
    %63 = vector.shape_cast %62 : vector<1x1x8x16xf32> to vector<1x8x16xf32>
    "tpu.trace_start"() <{level = 10 : i32, message = "bqg,bkg->bqk"}> : () -> ()
    %cst_37 = arith.constant dense<0.000000e+00> : vector<1x8x8xf32>
    %64 = tpu.matmul %61, %63, %cst_37 {dimension_numbers = #tpu.dot_dimension_numbers<[2], [2], [1], [1], [0, 0, 0, 1, 1, 1], [0], [0]>} : vector<1x8x16xf32>, vector<1x8x16xf32>, vector<1x8x8xf32> -> vector<1x8x8xf32>
    "tpu.trace_stop"() : () -> ()
    %65 = vector.shape_cast %64 : vector<1x8x8xf32> to vector<8x8xf32>
    %66 = vector.extract_strided_slice %9 {offsets = [1, 0, 0], sizes = [1, 8, 32], strides = [1, 1, 1]} : vector<4x8x32xf32> to vector<1x8x32xf32>
    %67 = vector.shape_cast %66 : vector<1x8x32xf32> to vector<8x32xf32>
    %cst_38 = arith.constant dense<0.000000e+00> : vector<8x32xf32>
    %68 = tpu.matmul %65, %67, %cst_38 {dimension_numbers = #tpu.dot_dimension_numbers<[1], [0], [0], [1], [0, 0, 1, 1], [], []>} : vector<8x8xf32>, vector<8x32xf32>, vector<8x32xf32> -> vector<8x32xf32>
    %69 = arith.addf %41, %68 : vector<8x32xf32>
    %70 = vector.extract_strided_slice %8 {offsets = [2, 0, 0], sizes = [1, 32, 8], strides = [1, 1, 1]} : vector<4x32x8xf32> to vector<1x32x8xf32>
    %71 = vector.shape_cast %70 : vector<1x32x8xf32> to vector<32x8xf32>
    %cst_39 = arith.constant dense<0.000000e+00> : vector<8x8xf32>
    %72 = tpu.matmul %5, %71, %cst_39 {dimension_numbers = #tpu.dot_dimension_numbers<[1], [0], [0], [1], [0, 0, 1, 1], [], []>} : vector<8x32xf32>, vector<32x8xf32>, vector<8x8xf32> -> vector<8x8xf32>
    %73 = vector.shape_cast %72 : vector<8x8xf32> to vector<1x8x8xf32>
    %74 = vector.extract_strided_slice %6 {offsets = [0, 2, 0, 0], sizes = [1, 1, 8, 16], strides = [1, 1, 1, 1]} : vector<1x4x8x16xf32> to vector<1x1x8x16xf32>
    %75 = vector.shape_cast %74 : vector<1x1x8x16xf32> to vector<1x8x16xf32>
    "tpu.trace_start"() <{level = 10 : i32, message = "bqk,bkg->bqg"}> : () -> ()
    %cst_40 = arith.constant dense<0.000000e+00> : vector<1x8x16xf32>
    %76 = tpu.matmul %73, %75, %cst_40 {dimension_numbers = #tpu.dot_dimension_numbers<[2], [1], [1], [2], [0, 0, 0, 1, 1, 2], [0], [0]>} : vector<1x8x8xf32>, vector<1x8x16xf32>, vector<1x8x16xf32> -> vector<1x8x16xf32>
    "tpu.trace_stop"() : () -> ()
    %cst_41 = arith.constant 0.353553385 : f32
    %77 = vector.broadcast %cst_41 : f32 to vector<1x8x16xf32>
    %78 = arith.mulf %77, %76 : vector<1x8x16xf32>
    %cst_42 = arith.constant -1.000000e+30 : f32
    %79 = vector.broadcast %cst_42 : f32 to vector<1x8x16xf32>
    %80 = arith.select %12, %78, %79 : vector<1x8x16xi1>, vector<1x8x16xf32>
    %cst_43 = arith.constant dense<0xFF800000> : vector<1x8xf32>
    %81 = vector.multi_reduction <maximumf>, %80, %cst_43 [2] : vector<1x8x16xf32> to vector<1x8xf32>
    %82 = vector.shape_cast %81 : vector<1x8xf32> to vector<1x8x1xf32>
    %83 = vector.broadcast %82 : vector<1x8x1xf32> to vector<1x8x16xf32>
    %84 = arith.subf %80, %83 : vector<1x8x16xf32>
    %85 = math.exp %84 : vector<1x8x16xf32>
    %cst_44 = arith.constant dense<0.000000e+00> : vector<1x8xf32>
    %86 = vector.multi_reduction <add>, %85, %cst_44 [2] : vector<1x8x16xf32> to vector<1x8xf32>
    %87 = vector.shape_cast %86 : vector<1x8xf32> to vector<1x8x1xf32>
    %88 = vector.broadcast %87 : vector<1x8x1xf32> to vector<1x8x16xf32>
    %89 = arith.divf %85, %88 : vector<1x8x16xf32>
    %90 = vector.extract_strided_slice %7 {offsets = [0, 2, 0, 0], sizes = [1, 1, 8, 16], strides = [1, 1, 1, 1]} : vector<1x4x8x16xf32> to vector<1x1x8x16xf32>
    %91 = vector.shape_cast %90 : vector<1x1x8x16xf32> to vector<1x8x16xf32>
    "tpu.trace_start"() <{level = 10 : i32, message = "bqg,bkg->bqk"}> : () -> ()
    %cst_45 = arith.constant dense<0.000000e+00> : vector<1x8x8xf32>
    %92 = tpu.matmul %89, %91, %cst_45 {dimension_numbers = #tpu.dot_dimension_numbers<[2], [2], [1], [1], [0, 0, 0, 1, 1, 1], [0], [0]>} : vector<1x8x16xf32>, vector<1x8x16xf32>, vector<1x8x8xf32> -> vector<1x8x8xf32>
    "tpu.trace_stop"() : () -> ()
    %93 = vector.shape_cast %92 : vector<1x8x8xf32> to vector<8x8xf32>
    %94 = vector.extract_strided_slice %9 {offsets = [2, 0, 0], sizes = [1, 8, 32], strides = [1, 1, 1]} : vector<4x8x32xf32> to vector<1x8x32xf32>
    %95 = vector.shape_cast %94 : vector<1x8x32xf32> to vector<8x32xf32>
    %cst_46 = arith.constant dense<0.000000e+00> : vector<8x32xf32>
    %96 = tpu.matmul %93, %95, %cst_46 {dimension_numbers = #tpu.dot_dimension_numbers<[1], [0], [0], [1], [0, 0, 1, 1], [], []>} : vector<8x8xf32>, vector<8x32xf32>, vector<8x32xf32> -> vector<8x32xf32>
    %97 = arith.addf %69, %96 : vector<8x32xf32>
    %98 = vector.extract_strided_slice %8 {offsets = [3, 0, 0], sizes = [1, 32, 8], strides = [1, 1, 1]} : vector<4x32x8xf32> to vector<1x32x8xf32>
    %99 = vector.shape_cast %98 : vector<1x32x8xf32> to vector<32x8xf32>
    %cst_47 = arith.constant dense<0.000000e+00> : vector<8x8xf32>
    %100 = tpu.matmul %5, %99, %cst_47 {dimension_numbers = #tpu.dot_dimension_numbers<[1], [0], [0], [1], [0, 0, 1, 1], [], []>} : vector<8x32xf32>, vector<32x8xf32>, vector<8x8xf32> -> vector<8x8xf32>
    %101 = vector.shape_cast %100 : vector<8x8xf32> to vector<1x8x8xf32>
    %102 = vector.extract_strided_slice %6 {offsets = [0, 3, 0, 0], sizes = [1, 1, 8, 16], strides = [1, 1, 1, 1]} : vector<1x4x8x16xf32> to vector<1x1x8x16xf32>
    %103 = vector.shape_cast %102 : vector<1x1x8x16xf32> to vector<1x8x16xf32>
    "tpu.trace_start"() <{level = 10 : i32, message = "bqk,bkg->bqg"}> : () -> ()
    %cst_48 = arith.constant dense<0.000000e+00> : vector<1x8x16xf32>
    %104 = tpu.matmul %101, %103, %cst_48 {dimension_numbers = #tpu.dot_dimension_numbers<[2], [1], [1], [2], [0, 0, 0, 1, 1, 2], [0], [0]>} : vector<1x8x8xf32>, vector<1x8x16xf32>, vector<1x8x16xf32> -> vector<1x8x16xf32>
    "tpu.trace_stop"() : () -> ()
    %cst_49 = arith.constant 0.353553385 : f32
    %105 = vector.broadcast %cst_49 : f32 to vector<1x8x16xf32>
    %106 = arith.mulf %105, %104 : vector<1x8x16xf32>
    %cst_50 = arith.constant -1.000000e+30 : f32
    %107 = vector.broadcast %cst_50 : f32 to vector<1x8x16xf32>
    %108 = arith.select %12, %106, %107 : vector<1x8x16xi1>, vector<1x8x16xf32>
    %cst_51 = arith.constant dense<0xFF800000> : vector<1x8xf32>
    %109 = vector.multi_reduction <maximumf>, %108, %cst_51 [2] : vector<1x8x16xf32> to vector<1x8xf32>
    %110 = vector.shape_cast %109 : vector<1x8xf32> to vector<1x8x1xf32>
    %111 = vector.broadcast %110 : vector<1x8x1xf32> to vector<1x8x16xf32>
    %112 = arith.subf %108, %111 : vector<1x8x16xf32>
    %113 = math.exp %112 : vector<1x8x16xf32>
    %cst_52 = arith.constant dense<0.000000e+00> : vector<1x8xf32>
    %114 = vector.multi_reduction <add>, %113, %cst_52 [2] : vector<1x8x16xf32> to vector<1x8xf32>
    %115 = vector.shape_cast %114 : vector<1x8xf32> to vector<1x8x1xf32>
    %116 = vector.broadcast %115 : vector<1x8x1xf32> to vector<1x8x16xf32>
    %117 = arith.divf %113, %116 : vector<1x8x16xf32>
    %118 = vector.extract_strided_slice %7 {offsets = [0, 3, 0, 0], sizes = [1, 1, 8, 16], strides = [1, 1, 1, 1]} : vector<1x4x8x16xf32> to vector<1x1x8x16xf32>
    %119 = vector.shape_cast %118 : vector<1x1x8x16xf32> to vector<1x8x16xf32>
    "tpu.trace_start"() <{level = 10 : i32, message = "bqg,bkg->bqk"}> : () -> ()
    %cst_53 = arith.constant dense<0.000000e+00> : vector<1x8x8xf32>
    %120 = tpu.matmul %117, %119, %cst_53 {dimension_numbers = #tpu.dot_dimension_numbers<[2], [2], [1], [1], [0, 0, 0, 1, 1, 1], [0], [0]>} : vector<1x8x16xf32>, vector<1x8x16xf32>, vector<1x8x8xf32> -> vector<1x8x8xf32>
    "tpu.trace_stop"() : () -> ()
    %121 = vector.shape_cast %120 : vector<1x8x8xf32> to vector<8x8xf32>
    %122 = vector.extract_strided_slice %9 {offsets = [3, 0, 0], sizes = [1, 8, 32], strides = [1, 1, 1]} : vector<4x8x32xf32> to vector<1x8x32xf32>
    %123 = vector.shape_cast %122 : vector<1x8x32xf32> to vector<8x32xf32>
    %cst_54 = arith.constant dense<0.000000e+00> : vector<8x32xf32>
    %124 = tpu.matmul %121, %123, %cst_54 {dimension_numbers = #tpu.dot_dimension_numbers<[1], [0], [0], [1], [0, 0, 1, 1], [], []>} : vector<8x8xf32>, vector<8x32xf32>, vector<8x32xf32> -> vector<8x32xf32>
    %125 = arith.addf %97, %124 : vector<8x32xf32>
    %c0_55 = arith.constant 0 : index
    %c0_56 = arith.constant 0 : index
    %126 = vector.load %arg10[%c0_55, %c0_56] : memref<32x32xf32, #tpu.memory_space<vmem>>, vector<32x32xf32>
    %cst_57 = arith.constant dense<0.000000e+00> : vector<8x32xf32>
    %127 = tpu.matmul %125, %126, %cst_57 {dimension_numbers = #tpu.dot_dimension_numbers<[1], [0], [0], [1], [0, 0, 1, 1], [], []>} : vector<8x32xf32>, vector<32x32xf32>, vector<8x32xf32> -> vector<8x32xf32>
    %128 = vector.shape_cast %127 : vector<8x32xf32> to vector<1x8x32xf32>
    %c0_58 = arith.constant 0 : index
    %c0_59 = arith.constant 0 : index
    %c0_60 = arith.constant 0 : index
    %129 = vector.load %arg5[%c0_58, %c0_59, %c0_60] : memref<1x32x16xf32, #tpu.memory_space<vmem>>, vector<1x32x16xf32>
    "tpu.trace_start"() <{level = 10 : i32, message = "bqe,beg->bqg"}> : () -> ()
    %cst_61 = arith.constant dense<0.000000e+00> : vector<1x8x16xf32>
    %130 = tpu.matmul %128, %129, %cst_61 {dimension_numbers = #tpu.dot_dimension_numbers<[2], [1], [1], [2], [0, 0, 0, 1, 1, 2], [0], [0]>} : vector<1x8x32xf32>, vector<1x32x16xf32>, vector<1x8x16xf32> -> vector<1x8x16xf32>
    "tpu.trace_stop"() : () -> ()
    %cst_62 = arith.constant 0.176776692 : f32
    %131 = vector.broadcast %cst_62 : f32 to vector<1x8x16xf32>
    %132 = arith.mulf %130, %131 : vector<1x8x16xf32>
    %133 = math.tanh %132 : vector<1x8x16xf32>
    %cst_63 = arith.constant 1.000000e+01 : f32
    %134 = vector.broadcast %cst_63 : f32 to vector<1x8x16xf32>
    %135 = arith.mulf %134, %133 : vector<1x8x16xf32>
    %c0_64 = arith.constant 0 : index
    %c0_65 = arith.constant 0 : index
    %c0_66 = arith.constant 0 : index
    %136 = vector.load %arg11[%c0_64, %c0_65, %c0_66] : memref<1x8x16xf32, #tpu.memory_space<vmem>>, vector<1x8x16xf32>
    tpu.vector_store %arg11[%c0_64, %c0_65, %c0_66], %135 {strides = array<i32>} : memref<1x8x16xf32, #tpu.memory_space<vmem>>, vector<1x8x16xf32>,
    return
  }
  func.func @transform_0(%arg0: i32) -> (i32, i32) {
    %c0_i32 = arith.constant 0 : i32
    %c0_i32_0 = arith.constant 0 : i32
    return %arg0, %c0_i32 : i32, i32
  }
  func.func @transform_1(%arg0: i32) -> (i32, i32, i32) {
    %c0_i32 = arith.constant 0 : i32
    %c0_i32_0 = arith.constant 0 : i32
    %c0_i32_1 = arith.constant 0 : i32
    return %arg0, %c0_i32, %c0_i32_0 : i32, i32, i32
  }
  func.func @transform_2(%arg0: i32) -> (i32, i32, i32, i32) {
    %c0_i32 = arith.constant 0 : i32
    %c0_i32_0 = arith.constant 0 : i32
    %c0_i32_1 = arith.constant 0 : i32
    %c0_i32_2 = arith.constant 0 : i32
    return %arg0, %c0_i32, %c0_i32_0, %c0_i32_1 : i32, i32, i32, i32
  }
  func.func @transform_3(%arg0: i32) -> (i32, i32, i32, i32) {
    %c0_i32 = arith.constant 0 : i32
    %c0_i32_0 = arith.constant 0 : i32
    %c0_i32_1 = arith.constant 0 : i32
    %c0_i32_2 = arith.constant 0 : i32
    return %arg0, %c0_i32, %c0_i32_0, %c0_i32_1 : i32, i32, i32, i32
  }
  func.func @transform_4(%arg0: i32) -> (i32, i32, i32) {
    %c0_i32 = arith.constant 0 : i32
    %c0_i32_0 = arith.constant 0 : i32
    %c0_i32_1 = arith.constant 0 : i32
    return %arg0, %c0_i32, %c0_i32_0 : i32, i32, i32
  }
  func.func @transform_5(%arg0: i32) -> (i32, i32) {
    %c0_i32 = arith.constant 0 : i32
    %c0_i32_0 = arith.constant 0 : i32
    %c0_i32_1 = arith.constant 0 : i32
    return %c0_i32, %c0_i32_0 : i32, i32
  }
  func.func @transform_6(%arg0: i32) -> (i32, i32) {
    %c0_i32 = arith.constant 0 : i32
    %c0_i32_0 = arith.constant 0 : i32
    %c0_i32_1 = arith.constant 0 : i32
    return %c0_i32, %c0_i32_0 : i32, i32
  }
  func.func @transform_7(%arg0: i32) -> (i32, i32, i32) {
    %c0_i32 = arith.constant 0 : i32
    %c0_i32_0 = arith.constant 0 : i32
    %c0_i32_1 = arith.constant 0 : i32
    %c0_i32_2 = arith.constant 0 : i32
    return %c0_i32, %c0_i32_0, %c0_i32_1 : i32, i32, i32
  }
  func.func @transform_8(%arg0: i32) -> (i32, i32, i32) {
    %c0_i32 = arith.constant 0 : i32
    %c0_i32_0 = arith.constant 0 : i32
    %c0_i32_1 = arith.constant 0 : i32
    %c0_i32_2 = arith.constant 0 : i32
    return %c0_i32, %c0_i32_0, %c0_i32_1 : i32, i32, i32
  }
  func.func @transform_9(%arg0: i32) -> (i32, i32) {
    %c0_i32 = arith.constant 0 : i32
    %c0_i32_0 = arith.constant 0 : i32
    %c0_i32_1 = arith.constant 0 : i32
    return %c0_i32, %c0_i32_0 : i32, i32
  }
  func.func @transform_10(%arg0: i32) -> (i32, i32, i32) {
    %c0_i32 = arith.constant 0 : i32
    %c0_i32_0 = arith.constant 0 : i32
    %c0_i32_1 = arith.constant 0 : i32
    return %arg0, %c0_i32, %c0_i32_0 : i32, i32, i32
  }
}

</mosaic_0001>

<bundles_post_ra>
// kernel: tpu_custom_call.1
= control target key start
LH: loop header
LB: loop body
LE: loop exit
PB: predicated region body
PF: predicated region fallthrough
CT: control target
= control target key end

     0   :  { %15 = vsyncpa [#allocation3], 0  ;;  %s2841_s0 = inlined_call_operand.vmem [shape: f32[16,8], index: 0, kind: input, shape index: {}]   ;;  %s2842_s1 = inlined_call_operand.vmem [shape: s8[2,8,16], index: 1, kind: input, shape index: {}]   ;;  %s2843_s2 = inlined_call_operand.vmem [shape: f32[2,4,8,16], index: 2, kind: input, shape index: {}]   ;;  %s2844_s3 = inlined_call_operand.vmem [shape: f32[2,4,8,16], index: 3, kind: input, shape index: {}]   ;;  %s2845_s4 = inlined_call_operand.vmem [shape: f32[2,32,16], index: 4, kind: input, shape index: {}]   ;;  %s2846_s5 = inlined_call_operand.vmem [shape: f32[8,32], index: 5, kind: input, shape index: {}]   ;;  %s2847_s6 = inlined_call_operand.vmem [shape: f32[1,32], index: 6, kind: input, shape index: {}]   ;;  %s2848_s7 = inlined_call_operand.vmem [shape: f32[4,32,8], index: 7, kind: input, shape index: {}]   ;;  %s2849_s8 = inlined_call_operand.vmem [shape: f32[4,8,32], index: 8, kind: input, shape index: {}]   ;;  %s2850_s9 = inlined_call_operand.vmem [shape: f32[32,32], index: 9, kind: input, shape index: {}]   ;;  %s2851_s10 = inlined_call_operand.hbm [shape: f32[2,8,16], index: 10, kind: output, shape index: {}]  }
   0x1   :  { %17 = vsyncpa [#allocation3 + $0x1], 0  ;;  %s2513_s13 = smov 0   ;;  %s2515_s14 = smov 0  }
   0x2   :  { %s2517_s15 = smov 0   ;;  %s2519_s16 = smov 0  }
   0x3 LB: > { %s2534_s17 = sadd.s32 4294967295, %s2451_s16   ;;  %s2056_s18 = sadd.s32 4294967294, %s2451_s16   ;;  %s2451_s16 = sphi %s2519_s16, %s2859_s16   ;;  %s2447_s15 = sphi %s2517_s15, %s2858_s15   ;;  %s2443_s14 = sphi %s2515_s14, %s2857_s14   ;;  %s2439_s13 = sphi %s2513_s13, %s2856_s13  }
   0x4   : > { %s2538_s19 = sadd.s32 1, %s2451_s16   ;;  %s265_s20 = sadd.s32 1, %s2447_s15 }
   0x5   : > { %s262_s21 = ssub.s32 %s2451_s16, %s2538_s19  ;;  %p275_p0 = scmp.ne.s32.totalorder %s2447_s15, %s2443_s14 }
   0x6   : > { %p263_p1 = scmp.eq.s32.totalorder %s262_s21, 0  ;;  %p276_p2 = scmp.eq.s32.totalorder %s2534_s17, 1 }
   0x7   : > { %p281_p3 = scmp.ne.s32.totalorder %s2443_s14, %s2439_s13  ;;  %p282_p4 = scmp.eq.s32.totalorder %s2056_s18, 1 }
   0x8   : > { %s2549_s22 = scalar_select %p263_p1, %s2447_s15, %s265_s20  }
   0x9   : > { %p2551_p5 = por %p276_p2, %p275_p0  ;;  %p2555_p6 = por %p282_p4, %p281_p3 }
   0xa   : > { %p2059_p7 = scmp.ge.s32.totalorder %s2451_s16, 1  ;;  %p353_p8 = scmp.lt.s32.totalorder %s2451_s16, 3 }
   0xc   : > { %p354_p9 = pnand %p2059_p7, %p353_p8 }
   0xd   : > { %v435_v0 = vld [vmem:[%s2846_s5] sm:$0xff] (!%p354_p9)  ;;  %p409_p10 = scmp.lt.s32.totalorder (!%p354_p9), %s2534_s17, 1  ;;  %v2453_v1 = vmov (!%p354_p9), 0.0   ;;  %vm2454_vm0 = vmmov (!%p354_p9), 0   ;;  %v526_v3 = vld [vmem:[%s2848_s7 + $0x8] sm:$0xff] (!%p354_p9)  ;;  %v527_v4 = vld [vmem:[%s2848_s7 + $0x10] sm:$0xff] (!%p354_p9) }
   0xe   : > { %357 = sbr.rel (%p354_p9) target bundleno = 4103 (0x1007), region = 60  ;;  %2156 = vmatprep.subr.mxu0 (!%p354_p9), %v2453_v1  ;;  %2158 = vmatprep.mubr.msk.f32.mxu0 (!%p354_p9), %vm2454_vm0, %v2453_v1  ;;  %v525_v2 = vld [vmem:[%s2848_s7] sm:$0xff] (!%p354_p9)  ;;  %v2455_v5 = vmov (!%p354_p9), 0.0|0.0   ;;  %v528_v7 = vld [vmem:[%s2848_s7 + $0x18] sm:$0xff] (!%p354_p9)  ;;  %vm443_vm1 = vcmask (!%p354_p9), 64512   ;;  %v530_v12 = vld [vmem:[%s2848_s7 + $0x28] sm:$0xff] (!%p354_p9) }
   0xf   : > { %2157 = vmatpush3.msra.mxu0 (!%p354_p9), %v435_v0  ;;  %2287 = vmatprep.subr.bf16.mxu1 (!%p354_p9), %v2455_v5  ;;  %v2288_v6 = vpack.c.bf16 (!%p354_p9), %v526_v3, %v525_v2  ;;  %v2291_v8 = vpack.c.bf16 (!%p354_p9), %v528_v7, %v527_v4  ;;  %v529_v11 = vld [vmem:[%s2848_s7 + $0x20] sm:$0xff] (!%p354_p9)  ;;  %vm547_vm2 = vcmask (!%p354_p9), 261120   ;;  %v531_v18 = vld [vmem:[%s2848_s7 + $0x30] sm:$0xff] (!%p354_p9)  ;;  %v532_v19 = vld [vmem:[%s2848_s7 + $0x38] sm:$0xff] (!%p354_p9)  ;;  %v2456_v26 = vmov (!%p354_p9), 0   ;;  %s2094_s20 = sshll.u32 (!%p354_p9), %s2534_s17, 7 }
  0x10   : > { %2169 = vmatprep.mubr.msk.f32.mxu1 (!%p354_p9), %vm2454_vm0, %v2453_v1  ;;  %2172 = vmatprep.subr.mxu0 (!%p354_p9), %v2453_v1  ;;  %v2069_v13 = vld [vmem:[%s2847_s6] ss:$0 sm:$0xff] (!%p354_p9)  ;;  %v2294_v15 = vpack.c.bf16 (!%p354_p9), %v530_v12, %v529_v11  ;;  %v2297_v20 = vpack.c.bf16 (!%p354_p9), %v532_v19, %v531_v18  ;;  %vm699_vm5 = vcmask (!%p354_p9), 130048   ;;  %v542_v62 = vld [vmem:[%s2849_s8 + $0x8] sm:$0xff] (!%p354_p9)  ;;  %v535_v3 = vld [vmem:[%s2848_s7 + $0x50] sm:$0xff] (!%p354_p9) }
  0x11   : > { %2289 = vmatpush3.bf16.msra.mxu1 (!%p354_p9), %v2288_v6  ;;  %v541_v45 = vld [vmem:[%s2849_s8] sm:$0xff] (!%p354_p9)  ;;  %v534_v0 = vld [vmem:[%s2848_s7 + $0x48] sm:$0xff] (!%p354_p9)  ;;  %v536_v4 = vld [vmem:[%s2848_s7 + $0x58] sm:$0xff] (!%p354_p9) }
  0x12   : > { %2290 = vmatprep.subr.bf16.mxu1 (!%p354_p9), %v2455_v5  ;;  %v533_v63 = vld [vmem:[%s2848_s7 + $0x40] sm:$0xff] (!%p354_p9) }
  0x13   : > { %v2300_v2 = vpack.c.bf16 (!%p354_p9), %v534_v0, %v533_v63 }
  0x15   : > { %s2578_s18 = scalar_select %p409_p10, %s2534_s17, 1  ;;  %2292 = vmatpush3.bf16.msra.mxu1 %v2291_v8  ;;  %v2303_v8 = vpack.c.bf16 %v536_v4, %v535_v3 }
  0x16   : > { %2293 = vmatprep.subr.bf16.mxu1 %v2455_v5  ;;  %s2457_s17 = smov [#allocation2]  }
  0x17   : > { %s2061_s25 = sshll.u32 %s2578_s18, 3  ;;  %s2597_s29 = sshll.u32 %s2578_s18, 5 }
  0x18   : > { %s412_s28 = scalar_lea.vmem %s2841_s0, %s2061_s25  ;;  %s2603_s12 = scalar_lea.vmem %s2843_s2, %s2597_s29 }
  0x19   : > { %v434_v9 = vld [vmem:[%s412_s28] sm:$0xff]  ;;  %s2062_s25 = sshll.u32 %s2578_s18, 1  ;;  %s2653_s11 = scalar_lea.vmem %s2844_s3, %s2597_s29  ;;  %v518_v44 = vld [vmem:[%s2603_s12 + $0x8] sm:$0xff] }
  0x1a   : > { %2159 = vmatmul.mubr.msk.f32.vlgmr.msra.gmra.mrb[0].mxu0 %vm443_vm1, %v434_v9  ;;  %v517_v10 = vld [vmem:[%s2603_s12] sm:$0xff]  ;;  %s416_s28 = scalar_lea.vmem %s2842_s1, %s2062_s25  ;;  %v522_v58 = vld [vmem:[%s2653_s11 + $0x8] sm:$0xff]  ;;  %v519_v9 = vld [vmem:[%s2603_s12 + $0x10] sm:$0xff] }
  0x1b   : > { %2174 = vmatprep.mubr.msk.f32.mxu0 %vm2454_vm0, %v2453_v1  ;;  %2173 = vmatpush3.msra.mxu0 %v517_v10  ;;  %v545_v25 = vld [vmem:[%s416_s28] sm:$0x3]  ;;  %s2798_s28 = scalar_lea.hbm %s2851_s10, %s2094_s20 }
  0x1c   : > { %2177 = vmatprep.subr.mxu0 %v2453_v1  ;;  %vm546_vm3 = vnez %v545_v25  ;;  %v521_v40 = vld [vmem:[%s2653_s11] sm:$0xff]  ;;  %v523_v25 = vld [vmem:[%s2653_s11 + $0x10] sm:$0xff] }
  0x1d   : > { %v695_v27 = vsel %vm546_vm3, 16843009, %v2456_v26 }
  0x1e   : > { %v696_v28 = vunpack.c.0.s8 %v695_v27  ;;  %v537_v27 = vld [vmem:[%s2848_s7 + $0x60] sm:$0xff] }
  0x20   : > { %vm2641_vm4 = vcmp.ne.s32.totalorder %v696_v28, 0  ;;  %v538_v28 = vld [vmem:[%s2848_s7 + $0x68] sm:$0xff] }
  0xed   : > { %v513_v14 = vpop.f32.mrb[0].mxu0 }
  0xee   : > { %v2616_v16 = vadd.f32 %v2069_v13, %v513_v14  ;;  %v2160_v17 = vpop.f32.mrb[1].mxu0 }
  0xf0   : > { %2170 = vmatmul.mubr.msk.f32.vlgmr.msra.gmra.mrb[0].mxu1 %vm547_vm2, %v2616_v16 }
  0xf1   : > { %2295 = vmatpush3.bf16.msra.mxu1 %v2294_v15  ;;  %2190 = vmatprep.mubr.msk.f32.mxu1 %vm2454_vm0, %v2453_v1 }
  0xf2   : > { %2296 = vmatprep.subr.bf16.mxu1 %v2455_v5 }
  0xf5   : > { %2298 = vmatpush3.bf16.msra.mxu1 %v2297_v20 }
  0xf6   : > { %2208 = vmatprep.subr.mxu1 %v2453_v1 }
  0xf8   : > { %2191 = vmatmul.mubr.msk.f32.vlgmr.msra.gmra.mrb[2].mxu1 %vm547_vm2, %v2616_v16 }
  0xf9   : > { %2210 = vmatprep.mubr.msk.f32.mxu1 %vm2454_vm0, %v2453_v1  ;;  %2209 = vmatpush3.msra.mxu1 %v541_v45 }
  0xfa   : > { %2224 = vmatprep.subr.mxu1 %v2453_v1 }
 0x1c3   : > { %v617_v21 = vpop.f32.mrb[0].mxu1 }
 0x1c4   : > { %v2171_v22 = vpop.f32.mrb[1].mxu1  ;;  %2175 = vmatmul.mubr.msk.f32.vlgmr.msra.gmra.mrb[2].mxu0 %vm443_vm1, %v617_v21 }
 0x1c5   : > { %2179 = vmatprep.mubr.msk.f32.mxu0 %vm2454_vm0, %v2453_v1  ;;  %2178 = vmatpush3.xpose.msk.msra.mxu0 %vm699_vm5, %v521_v40 }
 0x1c6   : > { %2193 = vmatprep.subr.mxu0 %v2453_v1 }
 0x1cb   : > { %v853_v23 = vpop.f32.mrb[2].mxu1 }
 0x1cc   : > { %v2192_v24 = vpop.f32.mrb[3].mxu1 }
 0x297   : > { %v690_v29 = vpop.f32.mrb[2].mxu0 }
 0x298   : > { %v694_v31 = vmul.f32 0.35355338, %v690_v29  ;;  %v2176_v32 = vpop.f32.mrb[3].mxu0 }
 0x29a   : > { %v698_v33 = vsel %vm2641_vm4, %v694_v31, -1e+30  ;;  %v2306_v31 = vpack.c.bf16 %v538_v28, %v537_v27 }
 0x29b   : > { %v700_v34 = vsel %vm699_vm5, %v698_v33, -inf }
 0x29c   : > { %701 = vmax.xlane.f32.xlu0 %v700_v34  ;;  %v540_v34 = vld [vmem:[%s2848_s7 + $0x78] sm:$0xff] }
 0x329   : > { %v702_v35 = vpop.xlane.xlu0 %701 }
 0x32a   : > { %v703_v36 = vsub.f32 %v698_v33, %v702_v35  ;;  %v539_v33 = vld [vmem:[%s2848_s7 + $0x70] sm:$0xff] }
 0x32b   : > { %v2309_v35 = vpack.c.bf16 %v540_v34, %v539_v33 }
 0x32c   : > { %v704_v37 = vmul.f32 1.442695, %v703_v36  ;;  %v543_v36 = vld [vmem:[%s2849_s8 + $0x10] sm:$0xff] }
 0x32e   : > { %2371 = vpow2.f32 %v704_v37  ;;  %v520_v37 = vld [vmem:[%s2603_s12 + $0x18] sm:$0xff] }
 0x338   : > { %v2372_v38 = vpop.eup %2371 }
 0x339   : > { %v706_v39 = vsel %vm699_vm5, %v2372_v38, 0.0 }
 0x33a   : > { %707 = vadd.xlane.f32.xlu0 %v706_v39 }
 0x3c7   : > { %v708_v41 = vpop.xlane.xlu0 %707 }
 0x3c8   : > { %2373 = vrcp.f32 %v708_v41 }
 0x3d2   : > { %v2374_v42 = vpop.eup %2373 }
 0x3d3   : > { %v710_v43 = vmul.f32 %v2374_v42, %v2372_v38 }
 0x3d5   : > { %2180 = vmatmul.mubr.msk.f32.vlgmr.msra.gmra.mrb[4].mxu0 %vm699_vm5, %v710_v43 }
 0x3d6   : > { %2194 = vmatpush3.msra.mxu0 %v518_v44  ;;  %2195 = vmatprep.mubr.msk.f32.mxu0 %vm2454_vm0, %v2453_v1 }
 0x3d7   : > { %2198 = vmatprep.subr.mxu0 %v2453_v1 }
 0x3d9   : > { %2196 = vmatmul.mubr.msk.f32.vlgmr.msra.gmra.mrb[6].mxu0 %vm443_vm1, %v853_v23 }
 0x3da   : > { %2200 = vmatprep.mubr.msk.f32.mxu0 %vm2454_vm0, %v2453_v1 }
 0x3dd   : > { %2199 = vmatpush3.xpose.msk.msra.mxu0 %vm699_vm5, %v522_v58 }
 0x3de   : > { %2203 = vmatprep.subr.mxu0 %v2453_v1 }
 0x4a8   : > { %v783_v46 = vpop.f32.mrb[4].mxu0 }
 0x4a9   : > { %v2181_v47 = vpop.f32.mrb[5].mxu0  ;;  %2211 = vmatmul.mubr.msk.f32.vlgmr.msra.gmra.mrb[4].mxu1 %vm443_vm1, %v783_v46 }
 0x4aa   : > { %2226 = vmatprep.mubr.msk.f32.mxu1 %vm2454_vm0, %v2453_v1  ;;  %2225 = vmatpush3.msra.mxu1 %v519_v9 }
 0x4ab   : > { %2234 = vmatprep.subr.mxu1 %v2453_v1 }
 0x4ac   : > { %v926_v48 = vpop.f32.mrb[6].mxu0 }
 0x4ad   : > { %v930_v49 = vmul.f32 0.35355338, %v926_v48  ;;  %v2197_v50 = vpop.f32.mrb[7].mxu0 }
 0x4af   : > { %v931_v51 = vsel %vm2641_vm4, %v930_v49, -1e+30 }
 0x4b0   : > { %v932_v52 = vsel %vm699_vm5, %v931_v51, -inf }
 0x4b1   : > { %933 = vmax.xlane.f32.xlu1 %v932_v52 }
 0x53e   : > { %v934_v53 = vpop.xlane.xlu1 %933 }
 0x53f   : > { %v935_v54 = vsub.f32 %v931_v51, %v934_v53  ;;  %v524_v51 = vld [vmem:[%s2653_s11 + $0x18] sm:$0xff]  ;;  %s431_s11 = scalar_lea.vmem %s2845_s4, %s2597_s29  ;;  %s406_s29 = sand.u32 1, %s2443_s14  }
 0x540   : > { %v1854_v63 = vld [vmem:[%s431_s11] sm:$0xff]  ;;  %v1855_v0 = vld [vmem:[%s431_s11 + $0x8] sm:$0xff]  ;;  %s2060_s30 = sshll.u32 %s406_s29, 3  ;;  %s1936_s12 = scalar_lea.sflag [#allocation3], %s406_s29 }
 0x541   : > { %v936_v55 = vmul.f32 1.442695, %v935_v54  ;;  %v544_v54 = vld [vmem:[%s2849_s8 + $0x18] sm:$0xff]  ;;  %v2318_v3 = vpack.c.bf16 %v1855_v0, %v1854_v63  ;;  %s408_s21 = scalar_lea.vmem [#allocation2], %s2060_s30 }
 0x542   : > { %s1949_s25 = sshll.u32 %s408_s21, 4  ;;  %s2800_s25 = int_to_ptr.vmem [resolvable:$true] %s1949_s25 }
 0x543   : > { %2375 = vpow2.f32 %v936_v55  ;;  %v1777_v55 = vld [vmem:[%s2850_s9] sm:$0xff]  ;;  %s2389_s18 = scalar_lea.vmem %s2800_s25, 128 }
 0x544   : > { %p2390_p11 = scmp.ne.s32.totalorder %s2800_s25, %s2389_s18 }
 0x546   : > { %p2391_p12 = pnand %p2390_p11, %p2551_p5 }
 0x548   : > { %p2392_p13 = pneg %p2391_p12 }
 0x54d   : > { %v2376_v56 = vpop.eup %2375 }
 0x54e   : > { %v938_v57 = vsel %vm699_vm5, %v2376_v56, 0.0 }
 0x54f   : > { %939 = vadd.xlane.f32.xlu1 %v938_v57 }
 0x5dc   : > { %v940_v59 = vpop.xlane.xlu1 %939 }
 0x5dd   : > { %2377 = vrcp.f32 %v940_v59 }
 0x5e7   : > { %v2378_v60 = vpop.eup %2377 }
 0x5e8   : > { %v942_v61 = vmul.f32 %v2378_v60, %v2376_v56  ;;  %v1778_v56 = vld [vmem:[%s2850_s9 + $0x8] sm:$0xff]  ;;  %v1779_v60 = vld [vmem:[%s2850_s9 + $0x10] sm:$0xff] }
 0x5e9   : > { %v2312_v57 = vpack.c.bf16 %v1778_v56, %v1777_v55 }
 0x5ea   : > { %2201 = vmatmul.mubr.msk.f32.vlgmr.msra.gmra.mrb[8].mxu0 %vm699_vm5, %v942_v61  ;;  %v1780_v61 = vld [vmem:[%s2850_s9 + $0x18] sm:$0xff] }
 0x5eb   : > { %2204 = vmatpush3.msra.mxu0 %v542_v62  ;;  %2205 = vmatprep.mubr.msk.f32.mxu0 %vm2454_vm0, %v2453_v1  ;;  %v2315_v62 = vpack.c.bf16 %v1780_v61, %v1779_v60 }
 0x5ec   : > { %2299 = vmatprep.subr.bf16.mxu0 %v2455_v5 }
 0x6bd   : > { %v1015_v6 = vpop.f32.mrb[8].mxu0 }
 0x6be   : > { %v2202_v7 = vpop.f32.mrb[9].mxu0  ;;  %2206 = vmatmul.mubr.msk.f32.vlgmr.msra.gmra.mrb[10].mxu0 %vm443_vm1, %v1015_v6 }
 0x6bf   : > { %2301 = vmatpush3.bf16.msra.mxu0 %v2300_v2  ;;  %2221 = vmatprep.mubr.msk.f32.mxu0 %vm2454_vm0, %v2453_v1  ;;  %v1856_v2 = vld [vmem:[%s431_s11 + $0x10] sm:$0xff] }
 0x6c0   : > { %2302 = vmatprep.subr.bf16.mxu0 %v2455_v5 }
 0x6c3   : > { %2304 = vmatpush3.bf16.msra.mxu0 %v2303_v8 }
 0x6c4   : > { %2229 = vmatprep.subr.mxu0 %v2453_v1 }
 0x6c6   : > { %2222 = vmatmul.mubr.msk.f32.vlgmr.msra.gmra.mrb[12].mxu0 %vm547_vm2, %v2616_v16 }
 0x6c7   : > { %2231 = vmatprep.mubr.msk.f32.mxu0 %vm2454_vm0, %v2453_v1 }
 0x6cc   : > { %2230 = vmatpush3.xpose.msk.msra.mxu0 %vm699_vm5, %v523_v25 }
 0x6cd   : > { %2305 = vmatprep.subr.bf16.mxu0 %v2455_v5 }
 0x791   : > { %v2710_v10 = vpop.f32.mrb[10].mxu0 }
 0x792   : > { %v2207_v11 = vpop.f32.mrb[11].mxu0 }
 0x799   : > { %v1231_v12 = vpop.f32.mrb[12].mxu0 }
 0x79a   : > { %v2223_v13 = vpop.f32.mrb[13].mxu0  ;;  %2227 = vmatmul.mubr.msk.f32.vlgmr.msra.gmra.mrb[6].mxu1 %vm443_vm1, %v1231_v12 }
 0x79b   : > { %2236 = vmatprep.mubr.msk.f32.mxu1 %vm2454_vm0, %v2453_v1  ;;  %2235 = vmatpush3.msra.mxu1 %v543_v36 }
 0x79c   : > { %2250 = vmatprep.subr.mxu1 %v2453_v1 }
 0x86d   : > { %v1304_v14 = vpop.f32.mrb[6].mxu1 }
 0x86e   : > { %v1308_v15 = vmul.f32 0.35355338, %v1304_v14  ;;  %v2228_v17 = vpop.f32.mrb[7].mxu1 }
 0x870   : > { %v1309_v18 = vsel %vm2641_vm4, %v1308_v15, -1e+30 }
 0x871   : > { %v1310_v19 = vsel %vm699_vm5, %v1309_v18, -inf }
 0x872   : > { %1311 = vmax.xlane.f32.xlu0 %v1310_v19 }
 0x8ff   : > { %v1312_v20 = vpop.xlane.xlu0 %1311 }
 0x900   : > { %v1313_v21 = vsub.f32 %v1309_v18, %v1312_v20 }
 0x902   : > { %v1314_v22 = vmul.f32 1.442695, %v1313_v21 }
 0x904   : > { %2379 = vpow2.f32 %v1314_v22 }
 0x90e   : > { %v2380_v23 = vpop.eup %2379 }
 0x90f   : > { %v1316_v24 = vsel %vm699_vm5, %v2380_v23, 0.0 }
 0x910   : > { %1317 = vadd.xlane.f32.xlu1 %v1316_v24 }
 0x99d   : > { %v1318_v26 = vpop.xlane.xlu1 %1317 }
 0x99e   : > { %2381 = vrcp.f32 %v1318_v26 }
 0x9a8   : > { %v2382_v29 = vpop.eup %2381 }
 0x9a9   : > { %v1320_v32 = vmul.f32 %v2382_v29, %v2380_v23 }
 0x9ab   : > { %2232 = vmatmul.mubr.msk.f32.vlgmr.msra.gmra.mrb[14].mxu0 %vm699_vm5, %v1320_v32 }
 0x9ac   : > { %2307 = vmatpush3.bf16.msra.mxu0 %v2306_v31  ;;  %2247 = vmatprep.mubr.msk.f32.mxu0 %vm2454_vm0, %v2453_v1 }
 0x9ad   : > { %2308 = vmatprep.subr.bf16.mxu0 %v2455_v5 }
 0x9b0   : > { %2310 = vmatpush3.bf16.msra.mxu0 %v2309_v35 }
 0x9b1   : > { %2311 = vmatprep.subr.bf16.mxu0 %v2455_v5 }
 0x9b3   : > { %2248 = vmatmul.mubr.msk.f32.vlgmr.msra.gmra.mrb[16].mxu0 %vm547_vm2, %v2616_v16 }
 0x9b4   : > { %2273 = vmatprep.mubr.msk.f32.mxu0 %vm2454_vm0, %v2453_v1  ;;  %2313 = vmatpush3.bf16.msra.mxu0 %v2312_v57 }
 0x9b5   : > { %2314 = vmatprep.subr.bf16.mxu0 %v2455_v5 }
 0x9b8   : > { %2316 = vmatpush3.bf16.msra.mxu0 %v2315_v62 }
 0xa7e   : > { %v1393_v38 = vpop.f32.mrb[14].mxu0 }
 0xa7f   : > { %v2233_v39 = vpop.f32.mrb[15].mxu0  ;;  %2237 = vmatmul.mubr.msk.f32.vlgmr.msra.gmra.mrb[4].mxu1 %vm443_vm1, %v1393_v38 }
 0xa80   : > { %2251 = vmatpush3.msra.mxu1 %v520_v37  ;;  %2252 = vmatprep.mubr.msk.f32.mxu1 %vm2454_vm0, %v2453_v1 }
 0xa81   : > { %2255 = vmatprep.subr.mxu1 %v2453_v1 }
 0xa86   : > { %v1537_v16 = vpop.f32.mrb[16].mxu0 }
 0xa87   : > { %v2249_v40 = vpop.f32.mrb[17].mxu0  ;;  %2253 = vmatmul.mubr.msk.f32.vlgmr.msra.gmra.mrb[8].mxu1 %vm443_vm1, %v1537_v16 }
 0xa88   : > { %2257 = vmatprep.mubr.msk.f32.mxu1 %vm2454_vm0, %v2453_v1  ;;  %2256 = vmatpush3.xpose.msk.msra.mxu1 %vm699_vm5, %v524_v51 }
 0xa89   : > { %2260 = vmatprep.subr.mxu1 %v2453_v1 }
 0xb5a   : > { %v1610_v41 = vpop.f32.mrb[8].mxu1 }
 0xb5b   : > { %v1614_v42 = vmul.f32 0.35355338, %v1610_v41  ;;  %v2254_v43 = vpop.f32.mrb[9].mxu1 }
 0xb5d   : > { %v1615_v44 = vsel %vm2641_vm4, %v1614_v42, -1e+30 }
 0xb5e   : > { %v1616_v45 = vsel %vm699_vm5, %v1615_v44, -inf }
 0xb5f   : > { %1617 = vmax.xlane.f32.xlu0 %v1616_v45 }
 0xbec   : > { %v1618_v46 = vpop.xlane.xlu0 %1617 }
 0xbed   : > { %v1619_v47 = vsub.f32 %v1615_v44, %v1618_v46 }
 0xbef   : > { %v1620_v48 = vmul.f32 1.442695, %v1619_v47 }
 0xbf1   : > { %2383 = vpow2.f32 %v1620_v48 }
 0xbfb   : > { %v2384_v49 = vpop.eup %2383 }
 0xbfc   : > { %v1622_v50 = vsel %vm699_vm5, %v2384_v49, 0.0 }
 0xbfd   : > { %1623 = vadd.xlane.f32.xlu1 %v1622_v50 }
 0xc8a   : > { %v1624_v52 = vpop.xlane.xlu1 %1623 }
 0xc8b   : > { %2385 = vrcp.f32 %v1624_v52 }
 0xc95   : > { %v2386_v30 = vpop.eup %2385 }
 0xc96   : > { %v1626_v53 = vmul.f32 %v2386_v30, %v2384_v49 }
 0xc98   : > { %2258 = vmatmul.mubr.msk.f32.vlgmr.msra.gmra.mrb[10].mxu1 %vm699_vm5, %v1626_v53 }
 0xc99   : > { %2261 = vmatpush3.msra.mxu1 %v544_v54  ;;  %2262 = vmatprep.mubr.msk.f32.mxu1 %vm2454_vm0, %v2453_v1 }
 0xc9a   : > { %2317 = vmatprep.subr.bf16.mxu1 %v2455_v5 }
 0xd6b   : > { %v1699_v58 = vpop.f32.mrb[10].mxu1 }
 0xd6c   : > { %v2259_v59 = vpop.f32.mrb[11].mxu1  ;;  %2263 = vmatmul.mubr.msk.f32.vlgmr.msra.gmra.mrb[4].mxu1 %vm443_vm1, %v1699_v58 }
 0xd6d   : > { %2284 = vmatprep.mubr.msk.f32.mxu1 %vm2454_vm0, %v2453_v1  ;;  %v1857_v1 = vld [vmem:[%s431_s11 + $0x18] sm:$0xff]  ;;  %2319 = vmatpush3.bf16.msra.mxu1 %v2318_v3  ;;  %s2393_s11 = sshll.u32 %s2457_s17, 4  ;;  %s2394_s11 = int_to_ptr.vmem [resolvable:$false] %s2393_s11 }
 0xd6e   : > { %v2321_v4 = vpack.c.bf16 %v1857_v1, %v1856_v2  ;;  %2320 = vmatprep.subr.bf16.mxu1 %v2455_v5  ;;  %s2395_s30 = scalar_lea.vmem %s2394_s11, 256  ;;  %p2396_p0 = scmp.lt.s32.totalorder %s2800_s25, %s2394_s11 }
 0xd6f   : > { %p2397_p1 = scmp.lt.s32.totalorder %s2395_s30, %s2389_s18 }
 0xd71   : > { %2322 = vmatpush3.bf16.msra.mxu1 %v2321_v4  ;;  %p2398_p2 = por %p2397_p1, %p2396_p0 }
 0xd73   : > { %p2399_p3 = pnand %p2398_p2, %p2392_p13 }
 0xe3f   : > { %v1772_v6 = vpop.f32.mrb[4].mxu1 }
 0xe40   : > { %v2323_v7 = vadd.f32 %v1772_v6, %v2710_v10  ;;  %v2264_v8 = vpop.f32.mrb[5].mxu1 }
 0xe42   : > { %2274 = vmatmul.mubr.msk.f32.vlgmr.msra.gmra.mrb[18].mxu0 %vm547_vm2, %v2323_v7 }
 0xf15   : > { %v1850_v9 = vpop.f32.mrb[18].mxu0 }
 0xf16   : > { %v2275_v11 = vpop.f32.mrb[19].mxu0  ;;  %2285 = vmatmul.mubr.msk.f32.vlgmr.msra.gmra.mrb[12].mxu1 %vm547_vm2, %v1850_v9 }
 0xfe9   : > { %v1927_v12 = vpop.f32.mrb[12].mxu1 }
 0xfea   : > { %v1931_v13 = vmul.f32 0.17677669, %v1927_v12  ;;  %v2286_v14 = vpop.f32.mrb[13].mxu1 }
 0xfec   : > { %2387 = vtanh.f32 %v1931_v13 }
 0xff6   : > { %v2388_v5 = vpop.eup %2387 }
 0xff7   : > { %v1933_v15 = vmul.f32 10.0, %v2388_v5 }
 0xff9   : > { %1934 = vst.msk [vmem:[%s408_s21] sm:$0xff] %vm699_vm5, %v1933_v15 }
 0xffa   : > { %2402 = shalt.err (!%p2399_p3)
}
 0xffb   : > { %s2403_s29 = scalar_lea.hbm %s2798_s28, 128  ;;  %s2407_s26 = scalar_lea.hbm %s2851_s10, 256 }
 0xffc   : > { %p2404_p4 = scmp.ne.s32.totalorder %s2798_s28, %s2403_s29  ;;  %p2408_p9 = scmp.lt.u32.totalorder %s2798_s28, %s2851_s10 }
 0xffd   : > { %p2409_p10 = scmp.lt.u32.totalorder %s2407_s26, %s2403_s29  ;;  %p2411_p12 = scmp.lt.u32.totalorder %s2403_s29, %s2798_s28 }
 0xffe   : > { %p2405_p7 = pnand %p2404_p4, %p2551_p5 }
 0xfff   : > { %p2410_p11 = por %p2409_p10, %p2408_p9 }
0x1000   : > { %p2406_p8 = pneg %p2405_p7 }
0x1001   : > { %p2412_p13 = por %p2411_p12, %p2410_p11 }
0x1003   : > { %p2413_p0 = pnand %p2412_p13, %p2406_p8 }
0x1005   : > { %2416 = shalt.err (!%p2413_p0)
}
0x1006   : > { %2328 = dma.vmem_to_hbm [thread:$0]  (%p2551_p5), %s2800_s25, 128, %s2798_s28, %s1936_s12  }
0x1007 PF: > { %p2334_p1 = scmp.ge.s32.totalorder %s2451_s16, 2  ;;  %s1961_s18 = sand.u32 1, %s2439_s13  }
0x1008   : > { %s1962_s11 = scalar_lea.sflag [#allocation3], %s1961_s18 }
0x1009   : > { %p2331_p2 = pnand %p2334_p1, %p2555_p6 }
0x100b   : > { %2434 = dma.done.wait (!%p2331_p2), %s1962_s11, 128  }
0x100c   : > { %2436 = vsyncadd (!%p2331_p2), %s1962_s11, 4294967168  ;;  %p20_p3 = scmp.ge.s32.totalorder %s2538_s19, 4   ;;  %s2856_s13 = smov %s2443_s14 }
0x100d   : > { %s2857_s14 = smov %s2447_s15  ;;  %s2858_s15 = smov %s2549_s22 }
0x100e   : > { %s2859_s16 = smov %s2538_s19  ;;  %22 = sbr.rel (!%p20_p3) target bundleno = 3 (0x3), region = 107 }
0x1015   :  { %1967 = vsyncpa [#allocation3], 1 }
0x1016   :  { %1969 = vsyncpa [#allocation3 + $0x1], 1 }

</bundles_post_ra>
